<compile_context>
chip_gen: v6e
topology: v6e:2x2x1
jax: 0.10.0
libtpu: 0.0.40
codegen_flags: <defaults>
</compile_context>

<pallas_src>
import math
import numpy as np
import jax
import jax.numpy as jnp
from jax.experimental import pallas as pl
from jax.experimental.pallas import tpu as pltpu


def _round_up(x, m):
    return (x + m - 1) // m * m


# ----------------------------------------------------------------------------
# Deterministic parameter construction (matches torch.stft with window=None,
# torchaudio MelScale (mel_scale="htk", norm=None), create_dct(norm="ortho")).
# ----------------------------------------------------------------------------
def make_dft_mats(n_fft):
    """Real/imag DFT matrices for one-sided STFT with rectangular (None) window."""
    n_freq = n_fft // 2 + 1
    n = np.arange(n_fft)[:, None]            # (n_fft, 1)
    k = np.arange(n_freq)[None, :]           # (1, n_freq)
    ang = 2.0 * np.pi * n * k / n_fft
    cos_mat = np.cos(ang).astype(np.float32)          # real part basis
    sin_mat = (-np.sin(ang)).astype(np.float32)       # imag part basis
    return cos_mat, sin_mat


def hz_to_mel_htk(f):
    return 2595.0 * np.log10(1.0 + f / 700.0)


def mel_to_hz_htk(m):
    return 700.0 * (10.0 ** (m / 2595.0) - 1.0)


def make_mel_fb(n_freqs, f_min, f_max, n_mels, sample_rate):
    """torchaudio.functional.melscale_fbanks (mel_scale='htk', norm=None)."""
    all_freqs = np.linspace(0.0, sample_rate // 2, n_freqs)
    m_min = hz_to_mel_htk(f_min)
    m_max = hz_to_mel_htk(f_max)
    m_pts = np.linspace(m_min, m_max, n_mels + 2)
    f_pts = mel_to_hz_htk(m_pts)
    f_diff = f_pts[1:] - f_pts[:-1]                          # (n_mels+1,)
    slopes = f_pts[None, :] - all_freqs[:, None]             # (n_freqs, n_mels+2)
    down_slopes = (-1.0 * slopes[:, :-2]) / f_diff[:-1]
    up_slopes = slopes[:, 2:] / f_diff[1:]
    fb = np.maximum(0.0, np.minimum(down_slopes, up_slopes))
    return fb.astype(np.float32)                             # (n_freqs, n_mels)


def make_dct_mat(n_mfcc, n_mels, norm="ortho"):
    """torchaudio.functional.create_dct -> (n_mels, n_mfcc)."""
    n = np.arange(n_mels, dtype=np.float64)
    k = np.arange(n_mfcc, dtype=np.float64)[:, None]
    dct = np.cos(math.pi / n_mels * (n + 0.5) * k)           # (n_mfcc, n_mels)
    if norm is None:
        dct *= 2.0
    else:
        assert norm == "ortho"
        dct[0] *= 1.0 / math.sqrt(2.0)
        dct *= math.sqrt(2.0 / n_mels)
    return dct.T.astype(np.float32)                          # (n_mels, n_mfcc)


def _build_packed_mats(n_fft, n_freq, n_mels, n_mfcc, sample_rate, f_min, f_max, norm):
    """Lane-dense weight matrices with tight re|im column packing.

    Frequency bins whose mel-filterbank row is all-zero are dropped (exact — they
    multiply zero weights), and the sin columns start right after the cos columns,
    so the re|im axis is 2*n_live lanes (padded up to a multiple of 128) instead of
    2 * round_up(n_freq, 128).
    """
    cos_mat, sin_mat = make_dft_mats(n_fft)                       # (n_fft, n_freq)
    fb = make_mel_fb(n_freq, f_min, f_max, n_mels, sample_rate)   # (n_freq, n_mels)

    live = np.flatnonzero(np.any(fb != 0.0, axis=1))              # bins that reach any mel
    if live.size == 0:                                            # degenerate params: keep all
        live = np.arange(n_freq)
    n_live = int(live.size)

    n_fft_pad = _round_up(n_fft, 128)
    f2_pad = _round_up(2 * n_live, 128)
    mels_pad = _round_up(n_mels, 128)
    mfcc_pad = _round_up(n_mfcc, 128)

    dft = np.zeros((n_fft_pad, f2_pad), np.float32)               # [cos_live | sin_live]
    dft[:n_fft, :n_live] = cos_mat[:, live]
    dft[:n_fft, n_live:2 * n_live] = sin_mat[:, live]

    fb2 = np.zeros((f2_pad, mels_pad), np.float32)                # duplicated over re/im halves:
    fb2[:n_live, :n_mels] = fb[live]                              # (z*z) @ [fb;fb] == (re^2+im^2) @ fb
    fb2[n_live:2 * n_live, :n_mels] = fb[live]

    dct = make_dct_mat(n_mfcc, n_mels, norm)                      # (n_mels, n_mfcc)
    dct_pad = np.zeros((mels_pad, mfcc_pad), np.float32)          # zero rows beyond n_mels kill
    dct_pad[:n_mels, :n_mfcc] = dct                               # the log(1e-6) padding artifacts

    return dft, fb2, dct_pad, n_fft_pad, f2_pad, mels_pad, mfcc_pad


# ----------------------------------------------------------------------------
# Pallas kernel: one MXU-sized row tile of flattened (batch*frame) rows per step.
# ----------------------------------------------------------------------------
def _mfcc_kernel(frames_ref, dft_ref, fb2_ref, dct_ref, out_ref):
    # Dominant matmul in bf16 (bf16 x bf16 -> f32 acc on the MXU):
    # (tm, n_fft_pad) @ (n_fft_pad, f2_pad) -> z = [re | im]
    z = jnp.dot(frames_ref[...], dft_ref[...], preferred_element_type=jnp.float32)
    # (z*z) @ [fb; fb]  ==  (re^2 + im^2) @ fb   -> mel power spectrum (tm, mels_pad), f32.
    mel = jnp.dot(z * z, fb2_ref[...], preferred_element_type=jnp.float32)
    # Padded mel lanes carry log(1e-6) but meet zero DCT rows, so they are inert.
    # (At mels_pad=128 a vreg covers all lanes anyway, so there is nothing to skip on the EUP.)
    log_mel = jnp.log(mel + 1e-6)
    # (tm, mels_pad) @ (mels_pad, mfcc_pad) -> lane-dense output (unmasked stores).
    out_ref[...] = jnp.dot(log_mel, dct_ref[...], preferred_element_type=jnp.float32)


def mfcc_pallas(audio, *, n_fft=256, hop_length=128, n_mels=64, n_mfcc=16,
                sample_rate=16000, f_min=40.0, f_max=7600.0, norm="ortho",
                pad_end=True, tile_m=None):
    """MFCC forward matching the PyTorch Mfcc module. Returns (B, n_mfcc, n_frames)."""
    audio = jnp.asarray(audio, jnp.float32)
    B, L = audio.shape

    # pad_end (static shapes)
    if pad_end:
        remainder = (L - n_fft) % hop_length
        pad = 0 if remainder == 0 else hop_length - remainder
        if pad:
            audio = jnp.pad(audio, ((0, 0), (0, pad)))
        L = L + pad
    # torch.stft errors for signals shorter than n_fft; mirror that explicitly.
    assert L >= n_fft, f"audio length {L} shorter than n_fft={n_fft}"

    n_frames = 1 + (L - n_fft) // hop_length
    n_freq = n_fft // 2 + 1

    dft, fb2, dct_pad, n_fft_pad, f2_pad, mels_pad, mfcc_pad = _build_packed_mats(
        n_fft, n_freq, n_mels, n_mfcc, sample_rate, f_min, f_max, norm)

    # Frame extraction (plain-JAX gather glue), then flatten (B, T) -> rows.
    # TODO(synk): with hop == n_fft // 2 the gather duplicates audio bytes 2x in HBM; a
    #             manual-DMA variant streaming non-overlapping hop chunks and assembling
    #             frames in-kernel would halve input traffic.
    idx = np.arange(n_frames)[:, None] * hop_length + np.arange(n_fft)[None, :]
    frames = audio[:, idx].reshape(B * n_frames, n_fft)       # (M, n_fft)

    M = B * n_frames
    if tile_m is None:
        # Bigger tiles amortize the ~0.35 us/step grid overhead, but keep >=4 grid
        # steps when M allows so v7x's two TensorCores both get work and the DMA
        # pipeline has something to overlap; tiny inputs -> one 128-row tile.
        for cand in (512, 256, 128):
            tile_m = cand
            if cand == 128 or _round_up(M, cand) // cand >= 4:
                break
    m_pad = _round_up(M, tile_m)

    # bf16 frames feed the bf16-native MXU; accumulation stays f32 in-kernel.
    frames = jnp.pad(frames, ((0, m_pad - M), (0, n_fft_pad - n_fft))).astype(jnp.bfloat16)
    dft_bf16 = jnp.asarray(dft, dtype=jnp.bfloat16)

    out = pl.pallas_call(
        _mfcc_kernel,
        out_shape=jax.ShapeDtypeStruct((m_pad, mfcc_pad), jnp.float32),
        grid_spec=pltpu.PrefetchScalarGridSpec(
            num_scalar_prefetch=0,
            grid=(m_pad // tile_m,),
            in_specs=[
                pl.BlockSpec((tile_m, n_fft_pad), lambda i: (i, 0)),
                pl.BlockSpec((n_fft_pad, f2_pad), lambda i: (0, 0)),
                pl.BlockSpec((f2_pad, mels_pad), lambda i: (0, 0)),
                pl.BlockSpec((mels_pad, mfcc_pad), lambda i: (0, 0)),
            ],
            out_specs=pl.BlockSpec((tile_m, mfcc_pad), lambda i: (i, 0)),
        ),
        compiler_params=pltpu.CompilerParams(
            dimension_semantics=("parallel",),        # row tiles are independent -> 2 TCs on v7x
            vmem_limit_bytes=64 * 1024 * 1024,        # headroom for large-n_fft configs; tiny here
        ),
    )(frames, dft_bf16, jnp.asarray(fb2), jnp.asarray(dct_pad))

    # Slice valid region, restore (B, n_mfcc, n_frames) PyTorch convention.
    out = out[:M, :n_mfcc].reshape(B, n_frames, n_mfcc)
    return jnp.transpose(out, (0, 2, 1))


# ----------------------------------------------------------------------------
# Pure-JAX f32 reference for sanity checking.
# ----------------------------------------------------------------------------
def mfcc_ref(audio, *, n_fft=256, hop_length=128, n_mels=64, n_mfcc=16,
             sample_rate=16000, f_min=40.0, f_max=7600.0, norm="ortho",
             pad_end=True):
    audio = jnp.asarray(audio, jnp.float32)
    B, L = audio.shape
    if pad_end:
        remainder = (L - n_fft) % hop_length
        pad = 0 if remainder == 0 else hop_length - remainder
        if pad:
            audio = jnp.pad(audio, ((0, 0), (0, pad)))
        L = L + pad
    n_frames = 1 + (L - n_fft) // hop_length
    n_freq = n_fft // 2 + 1
    idx = np.arange(n_frames)[:, None] * hop_length + np.arange(n_fft)[None, :]
    frames = audio[:, idx]
    cos_mat, sin_mat = make_dft_mats(n_fft)
    fb = make_mel_fb(n_freq, f_min, f_max, n_mels, sample_rate)
    dct_mat = make_dct_mat(n_mfcc, n_mels, norm)
    re = frames @ cos_mat
    im = frames @ sin_mat
    power = re * re + im * im
    mel = power @ fb
    log_mel = jnp.log(mel + 1e-6)
    out = log_mel @ dct_mat
    return jnp.transpose(out, (0, 2, 1))


if __name__ == "__main__":
    key = jax.random.PRNGKey(0)
    B, L = 2, 1024
    audio = jax.random.normal(key, (B, L), dtype=jnp.float32)

    mfcc = jax.block_until_ready(mfcc_pallas(audio))
    ref = mfcc_ref(audio)

    assert mfcc.shape == ref.shape == (B, 16, 7), mfcc.shape
    # bf16 MXU on the dominant DFT matmul introduces ~1e-2-level absolute error after the
    # log/DCT stage (power spectrum has wide dynamic range); validate against the f32
    # reference at a matching tolerance.
    np.testing.assert_allclose(np.asarray(mfcc), np.asarray(ref), rtol=5e-2, atol=1e-1)
    print("KERNEL_OK")
</pallas_src>

<mosaic_0001>
module attributes {stable_mosaic.version = 11 : i64} {
  func.func @_mfcc_kernel(%arg0: i32, %arg1: memref<128x256xbf16, #tpu.memory_space<vmem>>, %arg2: memref<256x256xbf16, #tpu.memory_space<vmem>>, %arg3: memref<256x128xf32, #tpu.memory_space<vmem>>, %arg4: memref<128x128xf32, #tpu.memory_space<vmem>>, %arg5: memref<128x128xf32, #tpu.memory_space<vmem>>) attributes {dimension_semantics = [#tpu.dimension_semantics<parallel>], iteration_bounds = array<i64: 1>, scalar_prefetch = 0 : i64, scratch_operands = 0 : i64, tpu.core_type = #tpu.core_type<tc>, window_params = [{transform_indices = @transform_0, window_bounds = array<i64: 128, 256>}, {pipeline_mode = #tpu.pipeline_mode<synchronous>, transform_indices = @transform_1, window_bounds = array<i64: 256, 256>}, {pipeline_mode = #tpu.pipeline_mode<synchronous>, transform_indices = @transform_2, window_bounds = array<i64: 256, 128>}, {pipeline_mode = #tpu.pipeline_mode<synchronous>, transform_indices = @transform_3, window_bounds = array<i64: 128, 128>}, {transform_indices = @transform_4, window_bounds = array<i64: 128, 128>}]} {
    %c0 = arith.constant 0 : index
    %c0_0 = arith.constant 0 : index
    %0 = vector.load %arg1[%c0, %c0_0] : memref<128x256xbf16, #tpu.memory_space<vmem>>, vector<128x256xbf16>
    %c0_1 = arith.constant 0 : index
    %c0_2 = arith.constant 0 : index
    %1 = vector.load %arg2[%c0_1, %c0_2] : memref<256x256xbf16, #tpu.memory_space<vmem>>, vector<256x256xbf16>
    %cst = arith.constant dense<0.000000e+00> : vector<128x256xf32>
    %2 = tpu.matmul %0, %1, %cst {dimension_numbers = #tpu.dot_dimension_numbers<[1], [0], [0], [1], [0, 0, 1, 1], [], []>} : vector<128x256xbf16>, vector<256x256xbf16>, vector<128x256xf32> -> vector<128x256xf32>
    %3 = arith.mulf %2, %2 : vector<128x256xf32>
    %c0_3 = arith.constant 0 : index
    %c0_4 = arith.constant 0 : index
    %4 = vector.load %arg3[%c0_3, %c0_4] : memref<256x128xf32, #tpu.memory_space<vmem>>, vector<256x128xf32>
    %cst_5 = arith.constant dense<0.000000e+00> : vector<128x128xf32>
    %5 = tpu.matmul %3, %4, %cst_5 {dimension_numbers = #tpu.dot_dimension_numbers<[1], [0], [0], [1], [0, 0, 1, 1], [], []>} : vector<128x256xf32>, vector<256x128xf32>, vector<128x128xf32> -> vector<128x128xf32>
    %cst_6 = arith.constant 9.99999997E-7 : f32
    %6 = vector.broadcast %cst_6 : f32 to vector<128x128xf32>
    %7 = arith.addf %5, %6 : vector<128x128xf32>
    %8 = math.log %7 : vector<128x128xf32>
    %c0_7 = arith.constant 0 : index
    %c0_8 = arith.constant 0 : index
    %9 = vector.load %arg4[%c0_7, %c0_8] : memref<128x128xf32, #tpu.memory_space<vmem>>, vector<128x128xf32>
    %cst_9 = arith.constant dense<0.000000e+00> : vector<128x128xf32>
    %10 = tpu.matmul %8, %9, %cst_9 {dimension_numbers = #tpu.dot_dimension_numbers<[1], [0], [0], [1], [0, 0, 1, 1], [], []>} : vector<128x128xf32>, vector<128x128xf32>, vector<128x128xf32> -> vector<128x128xf32>
    %c0_10 = arith.constant 0 : index
    %c0_11 = arith.constant 0 : index
    %11 = vector.load %arg5[%c0_10, %c0_11] : memref<128x128xf32, #tpu.memory_space<vmem>>, vector<128x128xf32>
    tpu.vector_store %arg5[%c0_10, %c0_11], %10 {strides = array<i32>} : memref<128x128xf32, #tpu.memory_space<vmem>>, vector<128x128xf32>,
    return
  }
  func.func @transform_0(%arg0: i32) -> (i32, i32) {
    %c0_i32 = arith.constant 0 : i32
    %c0_i32_0 = arith.constant 0 : i32
    return %arg0, %c0_i32 : i32, i32
  }
  func.func @transform_1(%arg0: i32) -> (i32, i32) {
    %c0_i32 = arith.constant 0 : i32
    %c0_i32_0 = arith.constant 0 : i32
    %c0_i32_1 = arith.constant 0 : i32
    return %c0_i32, %c0_i32_0 : i32, i32
  }
  func.func @transform_2(%arg0: i32) -> (i32, i32) {
    %c0_i32 = arith.constant 0 : i32
    %c0_i32_0 = arith.constant 0 : i32
    %c0_i32_1 = arith.constant 0 : i32
    return %c0_i32, %c0_i32_0 : i32, i32
  }
  func.func @transform_3(%arg0: i32) -> (i32, i32) {
    %c0_i32 = arith.constant 0 : i32
    %c0_i32_0 = arith.constant 0 : i32
    %c0_i32_1 = arith.constant 0 : i32
    return %c0_i32, %c0_i32_0 : i32, i32
  }
  func.func @transform_4(%arg0: i32) -> (i32, i32) {
    %c0_i32 = arith.constant 0 : i32
    %c0_i32_0 = arith.constant 0 : i32
    return %arg0, %c0_i32 : i32, i32
  }
}

</mosaic_0001>

<bundles_post_ra>
// kernel: tpu_custom_call.1
= control target key start
LH: loop header
LB: loop body
LE: loop exit
PB: predicated region body
PF: predicated region fallthrough
CT: control target
= control target key end

     0   :  { %9 = vsyncpa [#allocation3], 0  ;;  %s1408_s0 = inlined_call_operand.hbm [shape: bf16[128,256], index: 0, kind: input, shape index: {}]   ;;  %s1409_s1 = inlined_call_operand.hbm [shape: bf16[256,256], index: 1, kind: input, shape index: {}]   ;;  %s1410_s2 = inlined_call_operand.hbm [shape: f32[256,128], index: 2, kind: input, shape index: {}]   ;;  %s1411_s3 = inlined_call_operand.hbm [shape: f32[128,128], index: 3, kind: input, shape index: {}]   ;;  %s1412_s4 = inlined_call_operand.hbm [shape: f32[128,128], index: 4, kind: output, shape index: {}]  }
   0x1   :  { %10 = vsyncpa [#allocation6], 0 }
   0x2   :  { %11 = vsyncpa [#allocation9], 0 }
   0x3   :  { %12 = vsyncpa [#allocation4], 0  ;;  %s1346_s15 = smov [#allocation5]   ;;  %s1347_s17 = smov [#allocation2]  }
   0x4   :  { %s30_s16 = sshll.u32 %s1346_s15, 4  ;;  %s18_s18 = sshll.u32 %s1347_s17, 4  ;;  %s31_s16 = int_to_ptr.vmem [resolvable:$true] %s30_s16  ;;  %s19_s18 = int_to_ptr.vmem [resolvable:$true] %s18_s18 }
   0x5   :  { %s1246_s19 = scalar_lea.vmem %s31_s16, 4096  ;;  %p1251_p1 = scmp.lt.s32.totalorder %s31_s16, %s31_s16 }
   0x6   :  { %p1247_p0 = scmp.ne.s32.totalorder %s31_s16, %s1246_s19  ;;  %p1252_p2 = scmp.lt.s32.totalorder %s1246_s19, %s1246_s19 }
   0x8   :  { %p1253_p3 = por %p1252_p2, %p1251_p1 }
   0xa   :  { %p1254_p4 = pnand %p1253_p3, %p1247_p0 }
   0xc   :  { %1257 = shalt.err (!%p1254_p4)
}
   0xd   :  { %s1348_s20 = smov 128   ;;  %s1349_s21 = smov 8  }
   0xe   :  { %36 = dma.hbm_to_vmem [thread:$0]  %s1409_s1, 4096, %s31_s16, [#allocation6], %s1348_s20, %s1348_s20, %s1349_s21  }
   0xf   :  { %s1266_s24 = scalar_lea.vmem %s19_s18, 2048  ;;  %p1271_p6 = scmp.lt.s32.totalorder %s19_s18, %s19_s18 }
  0x10   :  { %p1267_p5 = scmp.ne.s32.totalorder %s19_s18, %s1266_s24  ;;  %p1272_p7 = scmp.lt.s32.totalorder %s1266_s24, %s1266_s24 }
  0x12   :  { %p1273_p8 = por %p1272_p7, %p1271_p6 }
  0x14   :  { %p1274_p9 = pnand %p1273_p8, %p1267_p5 }
  0x16   :  { %1277 = shalt.err (!%p1274_p9)
}
  0x17   :  { %24 = dma.hbm_to_vmem [thread:$0]  %s1408_s0, 2048, %s19_s18, [#allocation3], %s1348_s20, %s1348_s20, %s1349_s21  }
  0x18   :  { %s1350_s27 = smov [#allocation7]   ;;  %s1351_s29 = smov [#allocation8]  }
  0x19   :  { %s42_s28 = sshll.u32 %s1350_s27, 4  ;;  %s54_s30 = sshll.u32 %s1351_s29, 4  ;;  %s43_s28 = int_to_ptr.vmem [resolvable:$true] %s42_s28  ;;  %s55_s30 = int_to_ptr.vmem [resolvable:$true] %s54_s30 }
  0x1a   :  { %s1286_s1 = scalar_lea.vmem %s43_s28, 4096  ;;  %p1291_p11 = scmp.lt.s32.totalorder %s43_s28, %s43_s28 }
  0x1b   :  { %p1287_p10 = scmp.ne.s32.totalorder %s43_s28, %s1286_s1  ;;  %p1292_p12 = scmp.lt.s32.totalorder %s1286_s1, %s1286_s1 }
  0x1d   :  { %p1293_p13 = por %p1292_p12, %p1291_p11 }
  0x1f   :  { %p1294_p0 = pnand %p1293_p13, %p1287_p10 }
  0x21   :  { %1297 = shalt.err (!%p1294_p0)
}
  0x22   :  { %48 = dma.hbm_to_vmem [thread:$0]  %s1410_s2, 4096, %s43_s28, [#allocation6], %s1348_s20, %s1348_s20, %s1349_s21  }
  0x23   :  { %s1306_s0 = scalar_lea.vmem %s55_s30, 2048  ;;  %p1311_p2 = scmp.lt.s32.totalorder %s55_s30, %s55_s30 }
  0x24   :  { %p1307_p1 = scmp.ne.s32.totalorder %s55_s30, %s1306_s0  ;;  %p1312_p3 = scmp.lt.s32.totalorder %s1306_s0, %s1306_s0 }
  0x26   :  { %p1313_p4 = por %p1312_p3, %p1311_p2 }
  0x28   :  { %p1314_p5 = pnand %p1313_p4, %p1307_p1 }
  0x2a   :  { %1317 = shalt.err (!%p1314_p5)
}
  0x2b   :  { %60 = dma.hbm_to_vmem [thread:$0]  %s1411_s3, 2048, %s55_s30, [#allocation9], %s1348_s20, %s1348_s20, %s1349_s21  }
  0x2c   :  { %1338 = dma.done.wait [#allocation3], 2048  }
  0x2d   :  { %1339 = vsyncadd [#allocation3], 4294965248 }
  0x2e   :  { %1340 = dma.done.wait [#allocation6], 8192  }
  0x2f   :  { %1341 = vsyncadd [#allocation6], 4294959104 }
  0x30   :  { %1342 = dma.done.wait [#allocation9], 2048  }
  0x31   :  { %1343 = vsyncadd [#allocation9], 4294965248  ;;  %v1134_v0 = vld [vmem:[#allocation5 + $0x74] ss:$8 sps:$4 sm:$0xff]   ;;  %v1136_v1 = vld [vmem:[#allocation5 + $0x70] ss:$8 sps:$4 sm:$0xff]  }
  0x32   :  { %361 = vmatprep.subr.bf16.mxu0 %v1134_v0  ;;  %v1137_v2 = vld [vmem:[#allocation5 + $0x64] ss:$8 sps:$4 sm:$0xff]   ;;  %v1139_v3 = vld [vmem:[#allocation5 + $0x60] ss:$8 sps:$4 sm:$0xff]   ;;  %v1140_v4 = vld [vmem:[#allocation5 + $0x54] ss:$8 sps:$4 sm:$0xff]  }
  0x33   :  { %362 = vmatpush1.bf16.msra.mxu0 %v1136_v1  ;;  %v1142_v5 = vld [vmem:[#allocation5 + $0x50] ss:$8 sps:$4 sm:$0xff]   ;;  %v1143_v6 = vld [vmem:[#allocation5 + $0x44] ss:$8 sps:$4 sm:$0xff]   ;;  %v1145_v7 = vld [vmem:[#allocation5 + $0x40] ss:$8 sps:$4 sm:$0xff]  }
  0x34   :  { %363 = vmatprep.subr.bf16.mxu0 %v1137_v2  ;;  %v1146_v8 = vld [vmem:[#allocation5 + $0x34] ss:$8 sps:$4 sm:$0xff]   ;;  %v1148_v9 = vld [vmem:[#allocation5 + $0x30] ss:$8 sps:$4 sm:$0xff]   ;;  %v1149_v10 = vld [vmem:[#allocation5 + $0x24] ss:$8 sps:$4 sm:$0xff]  }
  0x35   :  { %v1151_v11 = vld [vmem:[#allocation5 + $0x20] ss:$8 sps:$4 sm:$0xff]   ;;  %v1152_v12 = vld [vmem:[#allocation5 + $0x14] ss:$8 sps:$4 sm:$0xff]   ;;  %v1184_v13 = vld [vmem:[#allocation2 + $0x4] ss:$8 sps:$4 sm:$0xff]  }
  0x36   :  { %v1154_v14 = vld [vmem:[#allocation5 + $0x10] ss:$8 sps:$4 sm:$0xff]   ;;  %v1155_v15 = vld [vmem:[#allocation5 + $0x4] ss:$8 sps:$4 sm:$0xff]   ;;  %393 = vmatprep.mubr.bf16.mxu0 %v1184_v13  ;;  %v1157_v16 = vld [vmem:[#allocation5] ss:$8 sps:$4 sm:$0xff]  }
  0x37   :  { %364 = vmatpush1.bf16.msra.mxu0 %v1139_v3  ;;  %v1158_v17 = vld [vmem:[#allocation5 + $0xf4] ss:$8 sps:$4 sm:$0xff]   ;;  %v1160_v18 = vld [vmem:[#allocation5 + $0xf0] ss:$8 sps:$4 sm:$0xff]   ;;  %v1161_v19 = vld [vmem:[#allocation5 + $0xe4] ss:$8 sps:$4 sm:$0xff]  }
  0x38   :  { %365 = vmatprep.subr.bf16.mxu0 %v1140_v4  ;;  %v537_v20 = vld [vmem:[#allocation7 + $0xf8] sm:$0xff]  ;;  %v536_v22 = vld [vmem:[#allocation7 + $0xf0] sm:$0xff]  ;;  %v535_v24 = vld [vmem:[#allocation7 + $0xe8] sm:$0xff]  ;;  %s1352_s2 = smov [#allocation10]  }
  0x39   :  { %v521_v21 = vld [vmem:[#allocation7 + $0x78] sm:$0xff]  ;;  %959 = vmatprep.subr.mxu1 %v537_v20  ;;  %v520_v23 = vld [vmem:[#allocation7 + $0x70] sm:$0xff]  ;;  %v1163_v25 = vld [vmem:[#allocation5 + $0xe0] ss:$8 sps:$4 sm:$0xff]   ;;  %s897_s3 = sshll.u32 %s1352_s2, 4  ;;  %s898_s3 = int_to_ptr.vmem [resolvable:$true] %s897_s3 }
  0x3a   :  { %960 = vmatpush3.msra.mxu1 %v521_v21  ;;  %v519_v26 = vld [vmem:[#allocation7 + $0x68] sm:$0xff]  ;;  %v1164_v27 = vld [vmem:[#allocation5 + $0xd4] ss:$8 sps:$4 sm:$0xff]   ;;  %v534_v28 = vld [vmem:[#allocation7 + $0xe0] sm:$0xff]  ;;  %s1318_s9 = scalar_lea.vmem %s898_s3, 2048  ;;  %p1323_p7 = scmp.lt.s32.totalorder %s898_s3, %s898_s3 }
  0x3b   :  { %366 = vmatpush1.bf16.msra.mxu0 %v1142_v5  ;;  %961 = vmatprep.subr.mxu1 %v536_v22  ;;  %v518_v29 = vld [vmem:[#allocation7 + $0x60] sm:$0xff]  ;;  %v533_v30 = vld [vmem:[#allocation7 + $0xd8] sm:$0xff]  ;;  %v532_v34 = vld [vmem:[#allocation7 + $0xd0] sm:$0xff]  ;;  %p1319_p6 = scmp.ne.s32.totalorder %s898_s3, %s1318_s9  ;;  %p1324_p8 = scmp.lt.s32.totalorder %s1318_s9, %s1318_s9 }
  0x3c   :  { %367 = vmatprep.subr.bf16.mxu0 %v1143_v6  ;;  %962 = vmatpush3.msra.mxu1 %v520_v23  ;;  %v1166_v31 = vld [vmem:[#allocation5 + $0xd0] ss:$8 sps:$4 sm:$0xff]   ;;  %v1167_v33 = vld [vmem:[#allocation5 + $0xc4] ss:$8 sps:$4 sm:$0xff]   ;;  %v1169_v37 = vld [vmem:[#allocation5 + $0xc0] ss:$8 sps:$4 sm:$0xff]  }
  0x3d   :  { %963 = vmatprep.subr.mxu1 %v535_v24  ;;  %v517_v32 = vld [vmem:[#allocation7 + $0x58] sm:$0xff]  ;;  %v516_v35 = vld [vmem:[#allocation7 + $0x50] sm:$0xff]  ;;  %v531_v36 = vld [vmem:[#allocation7 + $0xc8] sm:$0xff]  ;;  %p1325_p9 = por %p1324_p8, %p1323_p7 }
  0x3e   :  { %964 = vmatpush3.msra.mxu1 %v519_v26  ;;  %v515_v38 = vld [vmem:[#allocation7 + $0x48] sm:$0xff]  ;;  %v1170_v39 = vld [vmem:[#allocation5 + $0xb4] ss:$8 sps:$4 sm:$0xff]   ;;  %v530_v40 = vld [vmem:[#allocation7 + $0xc0] sm:$0xff] }
  0x3f   :  { %368 = vmatpush1.bf16.msra.mxu0 %v1145_v7  ;;  %965 = vmatprep.subr.mxu1 %v534_v28  ;;  %v514_v41 = vld [vmem:[#allocation7 + $0x40] sm:$0xff]  ;;  %v529_v42 = vld [vmem:[#allocation7 + $0xb8] sm:$0xff]  ;;  %v528_v46 = vld [vmem:[#allocation7 + $0xb0] sm:$0xff]  ;;  %p1326_p10 = pnand %p1325_p9, %p1319_p6 }
  0x40   :  { %369 = vmatprep.subr.bf16.mxu0 %v1146_v8  ;;  %966 = vmatpush3.msra.mxu1 %v518_v29  ;;  %v1172_v43 = vld [vmem:[#allocation5 + $0xb0] ss:$8 sps:$4 sm:$0xff]   ;;  %v1173_v45 = vld [vmem:[#allocation5 + $0xa4] ss:$8 sps:$4 sm:$0xff]   ;;  %v1175_v49 = vld [vmem:[#allocation5 + $0xa0] ss:$8 sps:$4 sm:$0xff]  }
  0x41   :  { %967 = vmatprep.subr.mxu1 %v533_v30  ;;  %v513_v44 = vld [vmem:[#allocation7 + $0x38] sm:$0xff]  ;;  %v512_v47 = vld [vmem:[#allocation7 + $0x30] sm:$0xff]  ;;  %v527_v48 = vld [vmem:[#allocation7 + $0xa8] sm:$0xff] }
  0x42   :  { %968 = vmatpush3.msra.mxu1 %v517_v32  ;;  %v511_v50 = vld [vmem:[#allocation7 + $0x28] sm:$0xff]  ;;  %v1176_v51 = vld [vmem:[#allocation5 + $0x94] ss:$8 sps:$4 sm:$0xff]   ;;  %v526_v52 = vld [vmem:[#allocation7 + $0xa0] sm:$0xff] }
  0x43   :  { %370 = vmatpush1.bf16.msra.mxu0 %v1148_v9  ;;  %969 = vmatprep.subr.mxu1 %v532_v34  ;;  %v510_v53 = vld [vmem:[#allocation7 + $0x20] sm:$0xff]  ;;  %v525_v54 = vld [vmem:[#allocation7 + $0x98] sm:$0xff]  ;;  %v507_v13 = vld [vmem:[#allocation7 + $0x8] sm:$0xff] }
  0x44   :  { %371 = vmatprep.subr.bf16.mxu0 %v1149_v10  ;;  %970 = vmatpush3.msra.mxu1 %v516_v35  ;;  %v1178_v55 = vld [vmem:[#allocation5 + $0x90] ss:$8 sps:$4 sm:$0xff]   ;;  %v1179_v57 = vld [vmem:[#allocation5 + $0x84] ss:$8 sps:$4 sm:$0xff]   ;;  %v1181_v58 = vld [vmem:[#allocation5 + $0x80] ss:$8 sps:$4 sm:$0xff]  }
  0x45   :  { %971 = vmatprep.subr.mxu1 %v531_v36  ;;  %v509_v56 = vld [vmem:[#allocation7 + $0x18] sm:$0xff]  ;;  %v1182_v59 = vld [vmem:[#allocation2] ss:$8 sps:$4 sm:$0xff]   ;;  %v1188_v62 = vld [vmem:[#allocation2 + $0x24] ss:$8 sps:$4 sm:$0xff]  }
  0x46   :  { %972 = vmatpush3.msra.mxu1 %v515_v38  ;;  %v1185_v60 = vld [vmem:[#allocation2 + $0x14] ss:$8 sps:$4 sm:$0xff]   ;;  %v1187_v61 = vld [vmem:[#allocation2 + $0x10] ss:$8 sps:$4 sm:$0xff]   ;;  %v1190_v63 = vld [vmem:[#allocation2 + $0x20] ss:$8 sps:$4 sm:$0xff]  }
  0x47   :  { %372 = vmatpush1.bf16.msra.mxu0 %v1151_v11  ;;  %973 = vmatprep.subr.mxu1 %v530_v40  ;;  %v1191_v0 = vld [vmem:[#allocation2 + $0x34] ss:$8 sps:$4 sm:$0xff]   ;;  %v1193_v1 = vld [vmem:[#allocation2 + $0x30] ss:$8 sps:$4 sm:$0xff]   ;;  %v1194_v2 = vld [vmem:[#allocation2 + $0x44] ss:$8 sps:$4 sm:$0xff]  }
  0x48   :  { %373 = vmatprep.subr.bf16.mxu0 %v1152_v12  ;;  %974 = vmatpush3.msra.mxu1 %v514_v41  ;;  %v1196_v3 = vld [vmem:[#allocation2 + $0x40] ss:$8 sps:$4 sm:$0xff]   ;;  %v1197_v4 = vld [vmem:[#allocation2 + $0x54] ss:$8 sps:$4 sm:$0xff]   ;;  %v1199_v5 = vld [vmem:[#allocation2 + $0x50] ss:$8 sps:$4 sm:$0xff]  }
  0x49   :  { %975 = vmatprep.subr.mxu1 %v529_v42  ;;  %v1200_v6 = vld [vmem:[#allocation2 + $0x64] ss:$8 sps:$4 sm:$0xff]   ;;  %v1202_v7 = vld [vmem:[#allocation2 + $0x60] ss:$8 sps:$4 sm:$0xff]   ;;  %v1203_v8 = vld [vmem:[#allocation2 + $0x74] ss:$8 sps:$4 sm:$0xff]  }
  0x4a   :  { %976 = vmatpush3.msra.mxu1 %v513_v44  ;;  %v1205_v9 = vld [vmem:[#allocation2 + $0x70] ss:$8 sps:$4 sm:$0xff]   ;;  %v523_v12 = vld [vmem:[#allocation7 + $0x88] sm:$0xff] }
  0x4b   :  { %374 = vmatpush1.bf16.msra.mxu0 %v1154_v14  ;;  %977 = vmatprep.subr.mxu1 %v528_v46  ;;  %v524_v10 = vld [vmem:[#allocation7 + $0x90] sm:$0xff]  ;;  %v522_v14 = vld [vmem:[#allocation7 + $0x80] sm:$0xff] }
  0x4c   :  { %375 = vmatprep.subr.bf16.mxu0 %v1155_v15  ;;  %978 = vmatpush3.msra.mxu1 %v512_v47  ;;  %v508_v11 = vld [vmem:[#allocation7 + $0x10] sm:$0xff]  ;;  %v506_v15 = vld [vmem:[#allocation7] sm:$0xff] }
  0x4d   :  { %979 = vmatprep.subr.mxu1 %v527_v48  ;;  %v729_v22 = vld [vmem:[#allocation8 + $0x70] sm:$0xff] }
  0x4e   :  { %980 = vmatpush3.msra.mxu1 %v511_v50 }
  0x4f   :  { %376 = vmatpush1.bf16.msra.mxu0 %v1157_v16  ;;  %981 = vmatprep.subr.mxu1 %v526_v52  ;;  %v730_v16 = vld [vmem:[#allocation8 + $0x78] sm:$0xff] }
  0x50   :  { %377 = vmatprep.subr.bf16.mxu0 %v1158_v17  ;;  %982 = vmatpush3.msra.mxu1 %v510_v53 }
  0x51   :  { %983 = vmatprep.subr.mxu1 %v525_v54 }
  0x52   :  { %984 = vmatpush3.msra.mxu1 %v509_v56 }
  0x53   :  { %378 = vmatpush2.bf16.msra.mxu0 %v1160_v18  ;;  %985 = vmatprep.subr.mxu1 %v524_v10 }
  0x54   :  { %379 = vmatprep.subr.bf16.mxu0 %v1161_v19  ;;  %986 = vmatpush3.msra.mxu1 %v508_v11 }
  0x55   :  { %987 = vmatprep.subr.mxu1 %v523_v12 }
  0x56   :  { %988 = vmatpush3.msra.mxu1 %v507_v13 }
  0x57   :  { %380 = vmatpush2.bf16.msra.mxu0 %v1163_v25  ;;  %989 = vmatprep.subr.mxu1 %v522_v14  ;;  %v728_v25 = vld [vmem:[#allocation8 + $0x68] sm:$0xff] }
  0x58   :  { %381 = vmatprep.subr.bf16.mxu0 %v1164_v27  ;;  %990 = vmatpush3.msra.mxu1 %v506_v15 }
  0x59   :  { %1071 = vmatprep.subr.mxu1 %v730_v16 }
  0x5b   :  { %382 = vmatpush2.bf16.msra.mxu0 %v1166_v31 }
  0x5c   :  { %383 = vmatprep.subr.bf16.mxu0 %v1167_v33 }
  0x5f   :  { %384 = vmatpush2.bf16.msra.mxu0 %v1169_v37 }
  0x60   :  { %385 = vmatprep.subr.bf16.mxu0 %v1170_v39 }
  0x63   :  { %386 = vmatpush2.bf16.msra.mxu0 %v1172_v43 }
  0x64   :  { %387 = vmatprep.subr.bf16.mxu0 %v1173_v45 }
  0x67   :  { %388 = vmatpush2.bf16.msra.mxu0 %v1175_v49 }
  0x68   :  { %389 = vmatprep.subr.bf16.mxu0 %v1176_v51 }
  0x6b   :  { %390 = vmatpush2.bf16.msra.mxu0 %v1178_v55 }
  0x6c   :  { %391 = vmatprep.subr.bf16.mxu0 %v1179_v57 }
  0x6f   :  { %392 = vmatpush2.bf16.msra.mxu0 %v1181_v58 }
  0x72   :  { %394 = vmatmul.mubr.bf16.vlgmr.msra.gmra.mxu0 %v1182_v59 }
  0x73   :  { %403 = vmatprep.mubr.bf16.mxu0 %v1185_v60 }
  0x7a   :  { %404 = vmatmul.mubr.bf16.gmra.mxu0 %v1187_v61 }
  0x7b   :  { %413 = vmatprep.mubr.bf16.mxu0 %v1188_v62 }
  0x82   :  { %414 = vmatmul.mubr.bf16.gmra.mxu0 %v1190_v63 }
  0x83   :  { %423 = vmatprep.mubr.bf16.mxu0 %v1191_v0 }
  0x8a   :  { %424 = vmatmul.mubr.bf16.gmra.mxu0 %v1193_v1 }
  0x8b   :  { %433 = vmatprep.mubr.bf16.mxu0 %v1194_v2 }
  0x92   :  { %434 = vmatmul.mubr.bf16.gmra.mxu0 %v1196_v3 }
  0x93   :  { %443 = vmatprep.mubr.bf16.mxu0 %v1197_v4 }
  0x9a   :  { %444 = vmatmul.mubr.bf16.gmra.mxu0 %v1199_v5 }
  0x9b   :  { %453 = vmatprep.mubr.bf16.mxu0 %v1200_v6 }
  0xa2   :  { %454 = vmatmul.mubr.bf16.gmra.mxu0 %v1202_v7 }
  0xa3   :  { %463 = vmatprep.mubr.bf16.mxu0 %v1203_v8 }
  0xaa   :  { %464 = vmatmul.mubr.bf16.gmra.mxu0 %v1205_v9 }
 0x132   :  { %v395_v17 = vpop.f32.mrf.mxu0 }
 0x133   :  { %v474_v20 = vmul.f32 %v395_v17, %v395_v17 }
 0x134   :  { %v397_v18 = vpop.f32.mrf.mxu0 }
 0x135   :  { %v475_v19 = vmul.f32 %v397_v18, %v397_v18 }
 0x136   :  { %v399_v21 = vpop.f32.mrf.mxu0 }
 0x137   :  { %602 = vmatprep.mubr.f32.mxu1 %v475_v19  ;;  %v476_v26 = vmul.f32 %v399_v21, %v399_v21  ;;  %v727_v19 = vld [vmem:[#allocation8 + $0x60] sm:$0xff]  ;;  %v725_v21 = vld [vmem:[#allocation8 + $0x50] sm:$0xff] }
 0x138   :  { %v401_v23 = vpop.f32.mrf.mxu0  ;;  %603 = vmatmul.mubr.f32.vlgmr.msra.gmra.mxu1 %v474_v20  ;;  %v726_v20 = vld [vmem:[#allocation8 + $0x58] sm:$0xff] }
 0x139   :  { %v477_v24 = vmul.f32 %v401_v23, %v401_v23  ;;  %1072 = vmatpush3.msra.mxu1 %v730_v16  ;;  %v723_v23 = vld [vmem:[#allocation8 + $0x40] sm:$0xff] }
 0x13a   :  { %v405_v27 = vpop.f32.mrf.mxu0  ;;  %1073 = vmatprep.subr.mxu1 %v729_v22 }
 0x13b   :  { %607 = vmatprep.mubr.f32.mxu1 %v477_v24  ;;  %1074 = vmatpush3.msra.mxu1 %v729_v22  ;;  %v478_v30 = vmul.f32 %v405_v27, %v405_v27  ;;  %v724_v22 = vld [vmem:[#allocation8 + $0x48] sm:$0xff]  ;;  %v722_v24 = vld [vmem:[#allocation8 + $0x38] sm:$0xff]  ;;  %v719_v27 = vld [vmem:[#allocation8 + $0x20] sm:$0xff] }
 0x13c   :  { %v407_v28 = vpop.f32.mrf.mxu0  ;;  %608 = vmatmul.mubr.f32.gmra.mxu1 %v476_v26  ;;  %1075 = vmatprep.subr.mxu1 %v728_v25  ;;  %v720_v26 = vld [vmem:[#allocation8 + $0x28] sm:$0xff] }
 0x13d   :  { %v479_v29 = vmul.f32 %v407_v28, %v407_v28  ;;  %1076 = vmatpush3.msra.mxu1 %v728_v25  ;;  %v721_v25 = vld [vmem:[#allocation8 + $0x30] sm:$0xff]  ;;  %v718_v28 = vld [vmem:[#allocation8 + $0x18] sm:$0xff] }
 0x13e   :  { %v409_v31 = vpop.f32.mrf.mxu0  ;;  %1077 = vmatprep.subr.mxu1 %v727_v19 }
 0x13f   :  { %612 = vmatprep.mubr.f32.mxu1 %v479_v29  ;;  %v480_v34 = vmul.f32 %v409_v31, %v409_v31  ;;  %1078 = vmatpush3.msra.mxu1 %v727_v19  ;;  %v717_v29 = vld [vmem:[#allocation8 + $0x10] sm:$0xff]  ;;  %v715_v31 = vld [vmem:[#allocation8] sm:$0xff] }
 0x140   :  { %v411_v32 = vpop.f32.mrf.mxu0  ;;  %613 = vmatmul.mubr.f32.gmra.mxu1 %v478_v30  ;;  %1079 = vmatprep.subr.mxu1 %v726_v20  ;;  %v716_v30 = vld [vmem:[#allocation8 + $0x8] sm:$0xff] }
 0x141   :  { %v481_v33 = vmul.f32 %v411_v32, %v411_v32  ;;  %1080 = vmatpush3.msra.mxu1 %v726_v20 }
 0x142   :  { %v415_v35 = vpop.f32.mrf.mxu0  ;;  %1081 = vmatprep.subr.mxu1 %v725_v21 }
 0x143   :  { %617 = vmatprep.mubr.f32.mxu1 %v481_v33  ;;  %v482_v38 = vmul.f32 %v415_v35, %v415_v35  ;;  %1082 = vmatpush3.msra.mxu1 %v725_v21 }
 0x144   :  { %v417_v36 = vpop.f32.mrf.mxu0  ;;  %618 = vmatmul.mubr.f32.gmra.mxu1 %v480_v34  ;;  %1083 = vmatprep.subr.mxu1 %v724_v22 }
 0x145   :  { %v483_v37 = vmul.f32 %v417_v36, %v417_v36  ;;  %1084 = vmatpush3.msra.mxu1 %v724_v22 }
 0x146   :  { %v419_v39 = vpop.f32.mrf.mxu0  ;;  %1085 = vmatprep.subr.mxu1 %v723_v23 }
 0x147   :  { %622 = vmatprep.mubr.f32.mxu1 %v483_v37  ;;  %v484_v42 = vmul.f32 %v419_v39, %v419_v39  ;;  %1086 = vmatpush3.msra.mxu1 %v723_v23 }
 0x148   :  { %v421_v40 = vpop.f32.mrf.mxu0  ;;  %623 = vmatmul.mubr.f32.gmra.mxu1 %v482_v38  ;;  %1087 = vmatprep.subr.mxu1 %v722_v24 }
 0x149   :  { %v485_v41 = vmul.f32 %v421_v40, %v421_v40  ;;  %1088 = vmatpush3.msra.mxu1 %v722_v24 }
 0x14a   :  { %v425_v43 = vpop.f32.mrf.mxu0  ;;  %1089 = vmatprep.subr.mxu1 %v721_v25 }
 0x14b   :  { %627 = vmatprep.mubr.f32.mxu1 %v485_v41  ;;  %v486_v46 = vmul.f32 %v425_v43, %v425_v43  ;;  %1090 = vmatpush3.msra.mxu1 %v721_v25 }
 0x14c   :  { %v427_v44 = vpop.f32.mrf.mxu0  ;;  %628 = vmatmul.mubr.f32.gmra.mxu1 %v484_v42  ;;  %1091 = vmatprep.subr.mxu1 %v720_v26 }
 0x14d   :  { %v487_v45 = vmul.f32 %v427_v44, %v427_v44  ;;  %1092 = vmatpush3.msra.mxu1 %v720_v26 }
 0x14e   :  { %v429_v47 = vpop.f32.mrf.mxu0  ;;  %1093 = vmatprep.subr.mxu1 %v719_v27 }
 0x14f   :  { %632 = vmatprep.mubr.f32.mxu1 %v487_v45  ;;  %v488_v50 = vmul.f32 %v429_v47, %v429_v47  ;;  %1094 = vmatpush3.msra.mxu1 %v719_v27 }
 0x150   :  { %v431_v48 = vpop.f32.mrf.mxu0  ;;  %633 = vmatmul.mubr.f32.gmra.mxu1 %v486_v46  ;;  %1095 = vmatprep.subr.mxu1 %v718_v28 }
 0x151   :  { %v489_v49 = vmul.f32 %v431_v48, %v431_v48  ;;  %1096 = vmatpush3.msra.mxu1 %v718_v28 }
 0x152   :  { %v435_v51 = vpop.f32.mrf.mxu0  ;;  %1097 = vmatprep.subr.mxu1 %v717_v29 }
 0x153   :  { %637 = vmatprep.mubr.f32.mxu1 %v489_v49  ;;  %v490_v54 = vmul.f32 %v435_v51, %v435_v51  ;;  %1098 = vmatpush3.msra.mxu1 %v717_v29 }
 0x154   :  { %v437_v52 = vpop.f32.mrf.mxu0  ;;  %638 = vmatmul.mubr.f32.gmra.mxu1 %v488_v50  ;;  %1099 = vmatprep.subr.mxu1 %v716_v30 }
 0x155   :  { %v491_v53 = vmul.f32 %v437_v52, %v437_v52  ;;  %1100 = vmatpush3.msra.mxu1 %v716_v30 }
 0x156   :  { %v439_v55 = vpop.f32.mrf.mxu0  ;;  %1101 = vmatprep.subr.mxu1 %v715_v31 }
 0x157   :  { %642 = vmatprep.mubr.f32.mxu1 %v491_v53  ;;  %v492_v58 = vmul.f32 %v439_v55, %v439_v55  ;;  %1102 = vmatpush3.msra.mxu1 %v715_v31 }
 0x158   :  { %v441_v56 = vpop.f32.mrf.mxu0  ;;  %643 = vmatmul.mubr.f32.gmra.mxu1 %v490_v54 }
 0x159   :  { %v493_v57 = vmul.f32 %v441_v56, %v441_v56 }
 0x15a   :  { %v445_v59 = vpop.f32.mrf.mxu0 }
 0x15b   :  { %647 = vmatprep.mubr.f32.mxu1 %v493_v57  ;;  %v494_v62 = vmul.f32 %v445_v59, %v445_v59 }
 0x15c   :  { %v447_v60 = vpop.f32.mrf.mxu0  ;;  %648 = vmatmul.mubr.f32.gmra.mxu1 %v492_v58 }
 0x15d   :  { %v495_v61 = vmul.f32 %v447_v60, %v447_v60 }
 0x15e   :  { %v449_v63 = vpop.f32.mrf.mxu0 }
 0x15f   :  { %652 = vmatprep.mubr.f32.mxu1 %v495_v61  ;;  %v496_v2 = vmul.f32 %v449_v63, %v449_v63 }
 0x160   :  { %v451_v0 = vpop.f32.mrf.mxu0  ;;  %653 = vmatmul.mubr.f32.gmra.mxu1 %v494_v62 }
 0x161   :  { %v497_v1 = vmul.f32 %v451_v0, %v451_v0 }
 0x162   :  { %v455_v3 = vpop.f32.mrf.mxu0 }
 0x163   :  { %657 = vmatprep.mubr.f32.mxu1 %v497_v1  ;;  %v498_v6 = vmul.f32 %v455_v3, %v455_v3 }
 0x164   :  { %v457_v4 = vpop.f32.mrf.mxu0  ;;  %658 = vmatmul.mubr.f32.gmra.mxu1 %v496_v2 }
 0x165   :  { %v499_v5 = vmul.f32 %v457_v4, %v457_v4 }
 0x166   :  { %v459_v7 = vpop.f32.mrf.mxu0 }
 0x167   :  { %662 = vmatprep.mubr.f32.mxu1 %v499_v5  ;;  %v500_v10 = vmul.f32 %v459_v7, %v459_v7 }
 0x168   :  { %v461_v8 = vpop.f32.mrf.mxu0  ;;  %663 = vmatmul.mubr.f32.gmra.mxu1 %v498_v6 }
 0x169   :  { %v501_v9 = vmul.f32 %v461_v8, %v461_v8 }
 0x16a   :  { %v465_v11 = vpop.f32.mrf.mxu0 }
 0x16b   :  { %667 = vmatprep.mubr.f32.mxu1 %v501_v9  ;;  %v502_v14 = vmul.f32 %v465_v11, %v465_v11 }
 0x16c   :  { %v467_v12 = vpop.f32.mrf.mxu0  ;;  %668 = vmatmul.mubr.f32.gmra.mxu1 %v500_v10 }
 0x16d   :  { %v503_v13 = vmul.f32 %v467_v12, %v467_v12 }
 0x16e   :  { %v469_v15 = vpop.f32.mrf.mxu0 }
 0x16f   :  { %672 = vmatprep.mubr.f32.mxu1 %v503_v13  ;;  %v504_v18 = vmul.f32 %v469_v15, %v469_v15 }
 0x170   :  { %v471_v16 = vpop.f32.mrf.mxu0  ;;  %673 = vmatmul.mubr.f32.gmra.mxu1 %v502_v14 }
 0x171   :  { %v505_v17 = vmul.f32 %v471_v16, %v471_v16 }
 0x173   :  { %677 = vmatprep.mubr.f32.mxu1 %v505_v17 }
 0x174   :  { %678 = vmatmul.mubr.f32.gmra.mxu1 %v504_v18 }
 0x1f8   :  { %v991_v32 = vpop.f32.mrf.mxu1 }
 0x1fa   :  { %v992_v33 = vpop.f32.mrf.mxu1 }
 0x1fb   :  { %v993_v34 = vadd.f32 %v992_v33, %v991_v32 }
 0x1fc   :  { %v994_v35 = vpop.f32.mrf.mxu1 }
 0x1fd   :  { %v605_v36 = vadd.f32 1e-06, %v993_v34 }
 0x1fe   :  { %v995_v37 = vpop.f32.mrf.mxu1 }
 0x1ff   :  { %1206 = vlog2.f32 %v605_v36  ;;  %v996_v38 = vadd.f32 %v995_v37, %v994_v35 }
 0x200   :  { %v997_v39 = vpop.f32.mrf.mxu1 }
 0x201   :  { %v610_v40 = vadd.f32 1e-06, %v996_v38 }
 0x202   :  { %v998_v41 = vpop.f32.mrf.mxu1 }
 0x203   :  { %1208 = vlog2.f32 %v610_v40  ;;  %v999_v42 = vadd.f32 %v998_v41, %v997_v39 }
 0x204   :  { %v1000_v43 = vpop.f32.mrf.mxu1 }
 0x205   :  { %v615_v44 = vadd.f32 1e-06, %v999_v42 }
 0x206   :  { %v1001_v45 = vpop.f32.mrf.mxu1 }
 0x207   :  { %1210 = vlog2.f32 %v615_v44  ;;  %v1002_v46 = vadd.f32 %v1001_v45, %v1000_v43 }
 0x208   :  { %v1003_v47 = vpop.f32.mrf.mxu1 }
 0x209   :  { %v620_v48 = vadd.f32 1e-06, %v1002_v46 }
 0x20a   :  { %v1004_v49 = vpop.f32.mrf.mxu1 }
 0x20b   :  { %1212 = vlog2.f32 %v620_v48  ;;  %v1005_v50 = vadd.f32 %v1004_v49, %v1003_v47 }
 0x20c   :  { %v1207_v51 = vpop.eup %1206  ;;  %v1006_v52 = vpop.f32.mrf.mxu1 }
 0x20d   :  { %v625_v53 = vadd.f32 1e-06, %v1005_v50  ;;  %v684_v54 = vmul.f32 0.6931472, %v1207_v51 }
 0x20e   :  { %v1007_v55 = vpop.f32.mrf.mxu1 }
 0x20f   :  { %1214 = vlog2.f32 %v625_v53  ;;  %v1008_v56 = vadd.f32 %v1007_v55, %v1006_v52  ;;  %1103 = vmatprep.mubr.f32.mxu1 %v684_v54 }
 0x210   :  { %v1209_v57 = vpop.eup %1208  ;;  %v1009_v58 = vpop.f32.mrf.mxu1 }
 0x211   :  { %v686_v59 = vmul.f32 0.6931472, %v1209_v57  ;;  %v630_v60 = vadd.f32 1e-06, %v1008_v56 }
 0x212   :  { %v1010_v61 = vpop.f32.mrf.mxu1 }
 0x213   :  { %1216 = vlog2.f32 %v630_v60  ;;  %v1011_v62 = vadd.f32 %v1010_v61, %v1009_v58  ;;  %1104 = vmatmul.mubr.f32.vlgmr.msra.gmra.mxu1 %v686_v59 }
 0x214   :  { %v1211_v63 = vpop.eup %1210  ;;  %v1012_v0 = vpop.f32.mrf.mxu1 }
 0x215   :  { %v635_v1 = vadd.f32 1e-06, %v1011_v62  ;;  %v688_v2 = vmul.f32 0.6931472, %v1211_v63 }
 0x216   :  { %v1013_v3 = vpop.f32.mrf.mxu1 }
 0x217   :  { %1218 = vlog2.f32 %v635_v1  ;;  %v1014_v4 = vadd.f32 %v1013_v3, %v1012_v0  ;;  %1106 = vmatprep.mubr.f32.mxu1 %v688_v2 }
 0x218   :  { %v1213_v5 = vpop.eup %1212  ;;  %v1015_v6 = vpop.f32.mrf.mxu1 }
 0x219   :  { %v640_v7 = vadd.f32 1e-06, %v1014_v4  ;;  %v690_v8 = vmul.f32 0.6931472, %v1213_v5 }
 0x21a   :  { %v1016_v9 = vpop.f32.mrf.mxu1 }
 0x21b   :  { %1220 = vlog2.f32 %v640_v7  ;;  %v1017_v10 = vadd.f32 %v1016_v9, %v1015_v6  ;;  %1107 = vmatmul.mubr.f32.gmra.mxu1 %v690_v8 }
 0x21c   :  { %v1215_v11 = vpop.eup %1214  ;;  %v1018_v12 = vpop.f32.mrf.mxu1 }
 0x21d   :  { %v645_v13 = vadd.f32 1e-06, %v1017_v10  ;;  %v692_v14 = vmul.f32 0.6931472, %v1215_v11 }
 0x21e   :  { %v1019_v15 = vpop.f32.mrf.mxu1 }
 0x21f   :  { %1222 = vlog2.f32 %v645_v13  ;;  %v1020_v16 = vadd.f32 %v1019_v15, %v1018_v12  ;;  %1109 = vmatprep.mubr.f32.mxu1 %v692_v14 }
 0x220   :  { %v1217_v17 = vpop.eup %1216  ;;  %v1021_v18 = vpop.f32.mrf.mxu1 }
 0x221   :  { %v650_v19 = vadd.f32 1e-06, %v1020_v16  ;;  %v694_v20 = vmul.f32 0.6931472, %v1217_v17 }
 0x222   :  { %v1022_v21 = vpop.f32.mrf.mxu1 }
 0x223   :  { %1224 = vlog2.f32 %v650_v19  ;;  %v1023_v22 = vadd.f32 %v1022_v21, %v1021_v18  ;;  %1110 = vmatmul.mubr.f32.gmra.mxu1 %v694_v20 }
 0x224   :  { %v1219_v23 = vpop.eup %1218  ;;  %v1024_v24 = vpop.f32.mrf.mxu1 }
 0x225   :  { %v655_v25 = vadd.f32 1e-06, %v1023_v22  ;;  %v696_v26 = vmul.f32 0.6931472, %v1219_v23 }
 0x226   :  { %v1025_v27 = vpop.f32.mrf.mxu1 }
 0x227   :  { %1226 = vlog2.f32 %v655_v25  ;;  %v1026_v28 = vadd.f32 %v1025_v27, %v1024_v24  ;;  %1112 = vmatprep.mubr.f32.mxu1 %v696_v26 }
 0x228   :  { %v1221_v29 = vpop.eup %1220  ;;  %v1027_v30 = vpop.f32.mrf.mxu1 }
 0x229   :  { %v660_v31 = vadd.f32 1e-06, %v1026_v28  ;;  %v698_v32 = vmul.f32 0.6931472, %v1221_v29 }
 0x22a   :  { %v1028_v33 = vpop.f32.mrf.mxu1 }
 0x22b   :  { %1228 = vlog2.f32 %v660_v31  ;;  %v1029_v34 = vadd.f32 %v1028_v33, %v1027_v30  ;;  %1113 = vmatmul.mubr.f32.gmra.mxu1 %v698_v32 }
 0x22c   :  { %v1223_v35 = vpop.eup %1222  ;;  %v1030_v36 = vpop.f32.mrf.mxu1 }
 0x22d   :  { %v665_v37 = vadd.f32 1e-06, %v1029_v34  ;;  %v700_v38 = vmul.f32 0.6931472, %v1223_v35 }
 0x22e   :  { %v1031_v39 = vpop.f32.mrf.mxu1 }
 0x22f   :  { %1230 = vlog2.f32 %v665_v37  ;;  %v1032_v40 = vadd.f32 %v1031_v39, %v1030_v36  ;;  %1115 = vmatprep.mubr.f32.mxu1 %v700_v38 }
 0x230   :  { %v1225_v41 = vpop.eup %1224  ;;  %v1033_v42 = vpop.f32.mrf.mxu1 }
 0x231   :  { %v670_v43 = vadd.f32 1e-06, %v1032_v40  ;;  %v702_v44 = vmul.f32 0.6931472, %v1225_v41 }
 0x232   :  { %v1034_v45 = vpop.f32.mrf.mxu1 }
 0x233   :  { %1232 = vlog2.f32 %v670_v43  ;;  %v1035_v46 = vadd.f32 %v1034_v45, %v1033_v42  ;;  %1116 = vmatmul.mubr.f32.gmra.mxu1 %v702_v44 }
 0x234   :  { %v1227_v47 = vpop.eup %1226  ;;  %v1036_v48 = vpop.f32.mrf.mxu1 }
 0x235   :  { %v675_v49 = vadd.f32 1e-06, %v1035_v46  ;;  %v704_v50 = vmul.f32 0.6931472, %v1227_v47 }
 0x236   :  { %v1037_v51 = vpop.f32.mrf.mxu1 }
 0x237   :  { %1234 = vlog2.f32 %v675_v49  ;;  %v1038_v52 = vadd.f32 %v1037_v51, %v1036_v48  ;;  %1118 = vmatprep.mubr.f32.mxu1 %v704_v50 }
 0x238   :  { %v1229_v53 = vpop.eup %1228 }
 0x239   :  { %v680_v54 = vadd.f32 1e-06, %v1038_v52  ;;  %v706_v55 = vmul.f32 0.6931472, %v1229_v53 }
 0x23b   :  { %1236 = vlog2.f32 %v680_v54  ;;  %1119 = vmatmul.mubr.f32.gmra.mxu1 %v706_v55 }
 0x23c   :  { %v1231_v56 = vpop.eup %1230 }
 0x23d   :  { %v708_v57 = vmul.f32 0.6931472, %v1231_v56 }
 0x23f   :  { %1121 = vmatprep.mubr.f32.mxu1 %v708_v57 }
 0x240   :  { %v1233_v58 = vpop.eup %1232 }
 0x241   :  { %v710_v59 = vmul.f32 0.6931472, %v1233_v58 }
 0x243   :  { %1122 = vmatmul.mubr.f32.gmra.mxu1 %v710_v59 }
 0x244   :  { %v1235_v60 = vpop.eup %1234 }
 0x245   :  { %v712_v61 = vmul.f32 0.6931472, %v1235_v60 }
 0x247   :  { %1124 = vmatprep.mubr.f32.mxu1 %v712_v61 }
 0x248   :  { %v1237_v62 = vpop.eup %1236 }
 0x249   :  { %v714_v63 = vmul.f32 0.6931472, %v1237_v62 }
 0x24b   :  { %1125 = vmatmul.mubr.f32.gmra.mxu1 %v714_v63 }
 0x2d3   :  { %v1105_v0 = vpop.f32.mrf.mxu1 }
 0x2d4   :  { %877 = vst [vmem:[#allocation10 + $0x8] sm:$0xff] %v1105_v0 }
 0x2d5   :  { %v797_v1 = vpop.f32.mrf.mxu1 }
 0x2d6   :  { %876 = vst [vmem:[#allocation10] sm:$0xff] %v797_v1 }
 0x2db   :  { %v1108_v2 = vpop.f32.mrf.mxu1 }
 0x2dc   :  { %879 = vst [vmem:[#allocation10 + $0x18] sm:$0xff] %v1108_v2 }
 0x2dd   :  { %v807_v3 = vpop.f32.mrf.mxu1 }
 0x2de   :  { %878 = vst [vmem:[#allocation10 + $0x10] sm:$0xff] %v807_v3 }
 0x2e3   :  { %v1111_v4 = vpop.f32.mrf.mxu1 }
 0x2e4   :  { %881 = vst [vmem:[#allocation10 + $0x28] sm:$0xff] %v1111_v4 }
 0x2e5   :  { %v817_v5 = vpop.f32.mrf.mxu1 }
 0x2e6   :  { %880 = vst [vmem:[#allocation10 + $0x20] sm:$0xff] %v817_v5 }
 0x2eb   :  { %v1114_v6 = vpop.f32.mrf.mxu1 }
 0x2ec   :  { %883 = vst [vmem:[#allocation10 + $0x38] sm:$0xff] %v1114_v6 }
 0x2ed   :  { %v827_v7 = vpop.f32.mrf.mxu1 }
 0x2ee   :  { %882 = vst [vmem:[#allocation10 + $0x30] sm:$0xff] %v827_v7 }
 0x2f3   :  { %v1117_v8 = vpop.f32.mrf.mxu1 }
 0x2f4   :  { %885 = vst [vmem:[#allocation10 + $0x48] sm:$0xff] %v1117_v8 }
 0x2f5   :  { %v837_v9 = vpop.f32.mrf.mxu1 }
 0x2f6   :  { %884 = vst [vmem:[#allocation10 + $0x40] sm:$0xff] %v837_v9 }
 0x2fb   :  { %v1120_v10 = vpop.f32.mrf.mxu1 }
 0x2fc   :  { %887 = vst [vmem:[#allocation10 + $0x58] sm:$0xff] %v1120_v10 }
 0x2fd   :  { %v847_v11 = vpop.f32.mrf.mxu1 }
 0x2fe   :  { %886 = vst [vmem:[#allocation10 + $0x50] sm:$0xff] %v847_v11 }
 0x303   :  { %v1123_v12 = vpop.f32.mrf.mxu1 }
 0x304   :  { %889 = vst [vmem:[#allocation10 + $0x68] sm:$0xff] %v1123_v12 }
 0x305   :  { %v857_v13 = vpop.f32.mrf.mxu1 }
 0x306   :  { %888 = vst [vmem:[#allocation10 + $0x60] sm:$0xff] %v857_v13 }
 0x30b   :  { %v1126_v14 = vpop.f32.mrf.mxu1 }
 0x30c   :  { %891 = vst [vmem:[#allocation10 + $0x78] sm:$0xff] %v1126_v14 }
 0x30d   :  { %v867_v15 = vpop.f32.mrf.mxu1 }
 0x30e   :  { %890 = vst [vmem:[#allocation10 + $0x70] sm:$0xff] %v867_v15 }
 0x30f   :  { %1329 = shalt.err (!%p1326_p10)
}
 0x310   :  { %903 = dma.vmem_to_hbm [thread:$0]  %s898_s3, 2048, %s1412_s4, [#allocation4], %s1348_s20, %s1348_s20, %s1349_s21  }
 0x311   :  { %1344 = dma.done.wait [#allocation4], 2048  }
 0x312   :  { %1345 = vsyncadd [#allocation4], 4294965248 }
 0x313   :  { %907 = vsyncpa [#allocation3], 1 }
 0x314   :  { %908 = vsyncpa [#allocation6], 1 }
 0x315   :  { %909 = vsyncpa [#allocation9], 1 }
 0x316   :  { %910 = vsyncpa [#allocation4], 1 }

</bundles_post_ra>
